<compile_context>
chip_gen: v5e
topology: v5e:2x2
jax: 0.10.0
libtpu: 0.0.40
codegen_flags: <defaults>
</compile_context>

<pallas_src>
import functools

import jax
import jax.numpy as jnp
from jax.experimental import pallas as pl
from jax.experimental.pallas import tpu as pltpu

LANE = 128
SUBLANE = 8
N_CORES = 2  # parallel grid axis: megacore split on v7x, harmless on v5e/v6e.


def _mse_partial_sum_kernel(x_ref, t_ref, acc_ref, *, tile, rows, n_chunks,
                            n_per_core):
    """Accumulate per-core (8, 128) partial sums of (x - t)^2.

    Grid is (N_CORES, n_per_core): axis 0 is "parallel", axis 1 is the
    sequential reduction axis. acc_ref is the resident output block for this
    core; the wrapper does the final cross-lane reduce and division.
    """
    p = pl.program_id(0)
    i = pl.program_id(1)
    b = p * n_per_core + i  # logical row-block index

    @pl.when(i == 0)
    def _():
        acc_ref[...] = jnp.zeros_like(acc_ref)

    d = x_ref[...].astype(jnp.float32) - t_ref[...].astype(jnp.float32)

    def _accumulate(dd):
        acc_ref[...] += jnp.sum((dd * dd).reshape(-1, SUBLANE, LANE),
                                axis=0)[None]

    # Masking is only needed if the last logical block is ragged or if the grid
    # was rounded up to an even per-core count (duplicate clamped reads). These
    # are static Python bools, so the steady state stays a pure VPU accumulate.
    ragged = (rows % tile != 0) or (n_chunks % N_CORES != 0)
    if not ragged:
        _accumulate(d)
    else:
        last = n_chunks - 1

        @pl.when(b < last)
        def _():
            _accumulate(d)

        @pl.when(b >= last)
        def _():
            # Valid rows in this logical block (<= 0 for pure padding blocks).
            limit = rows - b * tile
            row_ids = jax.lax.broadcasted_iota(jnp.int32, (tile, LANE), 0)
            _accumulate(jnp.where(row_ids < limit, d, jnp.float32(0.0)))


def mse_sequence_loss(inputs, targets, *, tile_rows=4096):
    """JAX/Pallas equivalent of MSESequenceLoss.forward.

    inputs:  (B, T, C, H, W)
    targets: (B, T, C, H, W) or (B, T-1, C, H, W)
    returns: scalar mean squared error.
    """
    T = inputs.shape[1]
    if targets.shape[1] != T:
        # Prepend the first target frame (plain-JAX glue, matches torch.cat).
        f_0 = targets[:, 0:1]
        targets = jnp.concatenate([f_0, targets], axis=1)
    assert inputs.shape == targets.shape, (inputs.shape, targets.shape)

    out_dtype = jnp.result_type(inputs.dtype, targets.dtype)
    n = int(inputs.size)

    x_flat = inputs.reshape(-1)
    t_flat = targets.reshape(-1)

    # Kernel handles the largest prefix whose length is a multiple of one
    # (8, 128) vreg (1024 elements) -- a free metadata reshape, no jnp.pad.
    # The remaining (< 1024 element) tail is summed in plain JAX.
    vreg_elems = SUBLANE * LANE
    n_main = (n // vreg_elems) * vreg_elems
    rows = n_main // LANE  # multiple of SUBLANE

    if n_main < n:
        xd = (x_flat[n_main:].astype(jnp.float32)
              - t_flat[n_main:].astype(jnp.float32))
        tail_sum = jnp.sum(xd * xd)
    else:
        tail_sum = jnp.float32(0.0)

    if rows == 0:
        return (tail_sum / jnp.float32(n)).astype(out_dtype)

    # tile_rows=4096 -> 2 MiB per f32 input block; 2 inputs x 2 pipeline
    # buffers = 8 MiB, safe under every chip's default scoped VMEM limit.
    tile = min(tile_rows, rows)
    tile = max(SUBLANE, (tile // SUBLANE) * SUBLANE)
    n_chunks = pl.cdiv(rows, tile)
    n_per_core = pl.cdiv(n_chunks, N_CORES)

    x2 = x_flat[:n_main].reshape(rows, LANE)
    t2 = t_flat[:n_main].reshape(rows, LANE)

    def in_index(p, i):
        # Clamp so padding grid steps re-read the last real block; their
        # contribution is masked to zero inside the kernel.
        return (jnp.minimum(p * n_per_core + i, n_chunks - 1), 0)

    kernel = functools.partial(
        _mse_partial_sum_kernel,
        tile=tile, rows=rows, n_chunks=n_chunks, n_per_core=n_per_core)

    itemsize = jnp.dtype(inputs.dtype).itemsize
    partials = pl.pallas_call(
        kernel,
        out_shape=jax.ShapeDtypeStruct((N_CORES, SUBLANE, LANE), jnp.float32),
        grid_spec=pltpu.PrefetchScalarGridSpec(
            num_scalar_prefetch=0,
            grid=(N_CORES, n_per_core),
            in_specs=[
                pl.BlockSpec((tile, LANE), in_index),
                pl.BlockSpec((tile, LANE), in_index),
            ],
            out_specs=pl.BlockSpec((1, SUBLANE, LANE), lambda p, i: (p, 0, 0)),
        ),
        compiler_params=pltpu.CompilerParams(
            dimension_semantics=("parallel", "arbitrary")),
        cost_estimate=pl.CostEstimate(
            flops=3 * n, transcendentals=0, bytes_accessed=2 * n * itemsize),
    )(x2, t2)

    total = jnp.sum(partials) + tail_sum
    return (total / jnp.float32(n)).astype(out_dtype)


def _reference(inputs, targets):
    T = inputs.shape[1]
    if targets.shape[1] != T:
        targets = jnp.concatenate([targets[:, 0:1], targets], axis=1)
    diff = inputs.astype(jnp.float32) - targets.astype(jnp.float32)
    return jnp.mean(diff * diff)


if __name__ == "__main__":
    key = jax.random.PRNGKey(0)
    k1, k2, k3, k4 = jax.random.split(key, 4)

    # (B, T, C, H, W); targets with T-1 frames exercise the prepend branch.
    B, T, C, H, W = 2, 8, 4, 16, 16
    inputs = jax.random.normal(k1, (B, T, C, H, W), dtype=jnp.float32)
    targets = jax.random.normal(k2, (B, T - 1, C, H, W), dtype=jnp.float32)

    loss = jax.block_until_ready(mse_sequence_loss(inputs, targets))
    ref = _reference(inputs, targets)
    assert jnp.allclose(loss, ref, rtol=1e-5, atol=1e-6), (loss, ref)

    # Odd-sized shape exercises the ragged-tile / plain-JAX-tail path.
    B2, T2, C2, H2, W2 = 2, 3, 3, 7, 9
    inputs2 = jax.random.normal(k3, (B2, T2, C2, H2, W2), dtype=jnp.float32)
    targets2 = jax.random.normal(k4, (B2, T2, C2, H2, W2), dtype=jnp.float32)

    loss2 = jax.block_until_ready(mse_sequence_loss(inputs2, targets2))
    ref2 = _reference(inputs2, targets2)
    assert jnp.allclose(loss2, ref2, rtol=1e-5, atol=1e-6), (loss2, ref2)

    print("KERNEL_OK")
</pallas_src>

<mosaic_0001>
module attributes {stable_mosaic.version = 11 : i64} {
  func.func @_mse_partial_sum_kernel(%arg0: i32, %arg1: i32, %arg2: memref<128x128xf32, #tpu.memory_space<vmem>>, %arg3: memref<128x128xf32, #tpu.memory_space<vmem>>, %arg4: memref<1x8x128xf32, #tpu.memory_space<vmem>>) attributes {dimension_semantics = [#tpu.dimension_semantics<parallel>, #tpu.dimension_semantics<arbitrary>], iteration_bounds = array<i64: 2, 1>, scalar_prefetch = 0 : i64, scratch_operands = 0 : i64, tpu.core_type = #tpu.core_type<tc>, window_params = [{transform_indices = @transform_0, window_bounds = array<i64: 128, 128>}, {transform_indices = @transform_1, window_bounds = array<i64: 128, 128>}, {transform_indices = @transform_2, window_bounds = array<i64: 1, 8, 128>}]} {
    %c1_i32 = arith.constant 1 : i32
    %0 = arith.muli %arg0, %c1_i32 : i32
    %1 = arith.addi %0, %arg1 : i32
    %c0_i32 = arith.constant 0 : i32
    %2 = arith.cmpi eq, %arg1, %c0_i32 : i32
    %3 = arith.extui %2 : i1 to i32
    %c0_i32_0 = arith.constant 0 : i32
    %4 = arith.cmpi ne, %3, %c0_i32_0 : i32
    scf.if %4 {
      %cst = arith.constant 0.000000e+00 : f32
      %14 = vector.broadcast %cst : f32 to vector<1x8x128xf32>
      %c0_8 = arith.constant 0 : index
      %c0_9 = arith.constant 0 : index
      %c0_10 = arith.constant 0 : index
      %15 = vector.load %arg4[%c0_8, %c0_9, %c0_10] : memref<1x8x128xf32, #tpu.memory_space<vmem>>, vector<1x8x128xf32>
      tpu.vector_store %arg4[%c0_8, %c0_9, %c0_10], %14 {strides = array<i32>} : memref<1x8x128xf32, #tpu.memory_space<vmem>>, vector<1x8x128xf32>,
    } else {
    }
    %c0 = arith.constant 0 : index
    %c0_1 = arith.constant 0 : index
    %5 = vector.load %arg2[%c0, %c0_1] : memref<128x128xf32, #tpu.memory_space<vmem>>, vector<128x128xf32>
    %c0_2 = arith.constant 0 : index
    %c0_3 = arith.constant 0 : index
    %6 = vector.load %arg3[%c0_2, %c0_3] : memref<128x128xf32, #tpu.memory_space<vmem>>, vector<128x128xf32>
    %7 = arith.subf %5, %6 : vector<128x128xf32>
    %c0_i32_4 = arith.constant 0 : i32
    %8 = arith.cmpi slt, %1, %c0_i32_4 : i32
    %9 = arith.extui %8 : i1 to i32
    %c0_i32_5 = arith.constant 0 : i32
    %10 = arith.cmpi ne, %9, %c0_i32_5 : i32
    scf.if %10 {
      %c0_8 = arith.constant 0 : index
      %c0_9 = arith.constant 0 : index
      %c0_10 = arith.constant 0 : index
      %14 = vector.load %arg4[%c0_8, %c0_9, %c0_10] : memref<1x8x128xf32, #tpu.memory_space<vmem>>, vector<1x8x128xf32>
      %15 = arith.mulf %7, %7 : vector<128x128xf32>
      %16 = vector.shape_cast %15 : vector<128x128xf32> to vector<16x8x128xf32>
      %cst = arith.constant dense<0.000000e+00> : vector<8x128xf32>
      %17 = vector.multi_reduction <add>, %16, %cst [0] : vector<16x8x128xf32> to vector<8x128xf32>
      %18 = vector.shape_cast %17 : vector<8x128xf32> to vector<1x8x128xf32>
      %19 = arith.addf %14, %18 : vector<1x8x128xf32>
      %c0_11 = arith.constant 0 : index
      %c0_12 = arith.constant 0 : index
      %c0_13 = arith.constant 0 : index
      %20 = vector.load %arg4[%c0_11, %c0_12, %c0_13] : memref<1x8x128xf32, #tpu.memory_space<vmem>>, vector<1x8x128xf32>
      tpu.vector_store %arg4[%c0_11, %c0_12, %c0_13], %19 {strides = array<i32>} : memref<1x8x128xf32, #tpu.memory_space<vmem>>, vector<1x8x128xf32>,
    } else {
    }
    %c0_i32_6 = arith.constant 0 : i32
    %11 = arith.cmpi sge, %1, %c0_i32_6 : i32
    %12 = arith.extui %11 : i1 to i32
    %c0_i32_7 = arith.constant 0 : i32
    %13 = arith.cmpi ne, %12, %c0_i32_7 : i32
    scf.if %13 {
      %c128_i32 = arith.constant 128 : i32
      %14 = arith.muli %1, %c128_i32 : i32
      %c128_i32_8 = arith.constant 128 : i32
      %15 = arith.subi %c128_i32_8, %14 : i32
      %16 = tpu.iota {dimensions = array<i32: 0>} : vector<128x128xi32>
      %17 = vector.broadcast %15 : i32 to vector<128x128xi32>
      %18 = arith.cmpi slt, %16, %17 : vector<128x128xi32>
      %cst = arith.constant 0.000000e+00 : f32
      %19 = vector.broadcast %cst : f32 to vector<128x128xf32>
      %20 = arith.select %18, %7, %19 : vector<128x128xi1>, vector<128x128xf32>
      %c0_9 = arith.constant 0 : index
      %c0_10 = arith.constant 0 : index
      %c0_11 = arith.constant 0 : index
      %21 = vector.load %arg4[%c0_9, %c0_10, %c0_11] : memref<1x8x128xf32, #tpu.memory_space<vmem>>, vector<1x8x128xf32>
      %22 = arith.mulf %20, %20 : vector<128x128xf32>
      %23 = vector.shape_cast %22 : vector<128x128xf32> to vector<16x8x128xf32>
      %cst_12 = arith.constant dense<0.000000e+00> : vector<8x128xf32>
      %24 = vector.multi_reduction <add>, %23, %cst_12 [0] : vector<16x8x128xf32> to vector<8x128xf32>
      %25 = vector.shape_cast %24 : vector<8x128xf32> to vector<1x8x128xf32>
      %26 = arith.addf %21, %25 : vector<1x8x128xf32>
      %c0_13 = arith.constant 0 : index
      %c0_14 = arith.constant 0 : index
      %c0_15 = arith.constant 0 : index
      %27 = vector.load %arg4[%c0_13, %c0_14, %c0_15] : memref<1x8x128xf32, #tpu.memory_space<vmem>>, vector<1x8x128xf32>
      tpu.vector_store %arg4[%c0_13, %c0_14, %c0_15], %26 {strides = array<i32>} : memref<1x8x128xf32, #tpu.memory_space<vmem>>, vector<1x8x128xf32>,
    } else {
    }
    return
  }
  func.func @transform_0(%arg0: i32, %arg1: i32) -> (i32, i32) {
    %c1_i32 = arith.constant 1 : i32
    %0 = arith.muli %arg0, %c1_i32 : i32
    %1 = arith.addi %0, %arg1 : i32
    %c0_i32 = arith.constant 0 : i32
    %2 = arith.minsi %1, %c0_i32 : i32
    %c0_i32_0 = arith.constant 0 : i32
    %c0_i32_1 = arith.constant 0 : i32
    return %2, %c0_i32_0 : i32, i32
  }
  func.func @transform_1(%arg0: i32, %arg1: i32) -> (i32, i32) {
    %c1_i32 = arith.constant 1 : i32
    %0 = arith.muli %arg0, %c1_i32 : i32
    %1 = arith.addi %0, %arg1 : i32
    %c0_i32 = arith.constant 0 : i32
    %2 = arith.minsi %1, %c0_i32 : i32
    %c0_i32_0 = arith.constant 0 : i32
    %c0_i32_1 = arith.constant 0 : i32
    return %2, %c0_i32_0 : i32, i32
  }
  func.func @transform_2(%arg0: i32, %arg1: i32) -> (i32, i32, i32) {
    %c0_i32 = arith.constant 0 : i32
    %c0_i32_0 = arith.constant 0 : i32
    %c0_i32_1 = arith.constant 0 : i32
    return %arg0, %c0_i32, %c0_i32_0 : i32, i32, i32
  }
}

</mosaic_0001>

<bundles_post_ra>
// kernel: tpu_custom_call.1
= control target key start
LH: loop header
LB: loop body
LE: loop exit
PB: predicated region body
PF: predicated region fallthrough
CT: control target
= control target key end

     0   :  { %7 = vsyncpa [#allocation3], 0  ;;  %s1148_s0 = inlined_call_operand.hbm [shape: f32[128,128], index: 0, kind: input, shape index: {}]   ;;  %s1149_s1 = inlined_call_operand.hbm [shape: f32[128,128], index: 1, kind: input, shape index: {}]   ;;  %s1150_s2 = inlined_call_operand.hbm [shape: f32[2,8,128], index: 2, kind: output, shape index: {}]  }
   0x1   :  { %9 = vsyncpa [#allocation3 + $0x1], 0 }
   0x2   :  { %10 = vsyncpa [#allocation6], 0 }
   0x3   :  { %12 = vsyncpa [#allocation6 + $0x1], 0 }
   0x4   :  { %13 = vsyncpa [#allocation4], 0 }
   0x5   :  { %15 = vsyncpa [#allocation4 + $0x1], 0  ;;  %s849_s9 = smov 0   ;;  %s851_s10 = smov 0  }
   0x6   :  { %s853_s11 = smov 0   ;;  %s855_s12 = smov 0  }
   0x7   :  { %s857_s13 = smov 0   ;;  %s859_s14 = smov 0  }
   0x8   :  { %s861_s15 = smov 0   ;;  %s863_s16 = smov 0  }
   0x9 LB: > { %s543_s17 = sadd.s32 4294967295, %s827_s16   ;;  %s544_s18 = sadd.s32 4294967294, %s827_s16   ;;  %s827_s16 = sphi %s863_s16, %s21_s16   ;;  %s823_s15 = sphi %s861_s15, %s1162_s15   ;;  %s819_s14 = sphi %s859_s14, %s1161_s14   ;;  %s815_s13 = sphi %s857_s13, %s1138_s13   ;;  %s811_s12 = sphi %s855_s12, %s1160_s12   ;;  %s807_s11 = sphi %s853_s11, %s1159_s11   ;;  %s803_s10 = sphi %s851_s10, %s1158_s10   ;;  %s799_s9 = sphi %s849_s9, %s1157_s9  }
   0xa   : > { %s33_s19 = sadd.s32 1, %s823_s15  ;;  %p796_p1 = scmp.ne.s32.totalorder %s815_s13, 0 }
   0xb   : > { %p35_p0 = scmp.ge.s32.totalorder %s33_s19, 2  ;;  %p54_p2 = scmp.eq.s32.totalorder %s827_s16, 0 }
   0xc   : > { %p59_p3 = scmp.ne.s32.totalorder %s815_s13, %s811_s12  ;;  %p60_p5 = scmp.eq.s32.totalorder %s543_s17, 0 }
   0xd   : > { %s1164_s19 = smov (%p35_p0, %s33_s19), 0  ;;  %p895_p4 = por %p796_p1, %p54_p2 }
   0xe   : > { %p899_p6 = por %p60_p5, %p59_p3  ;;  %s101_s22 = ssub.s32 %s823_s15, %s1164_s19 }
   0xf   : > { %p102_p7 = scmp.eq.s32.totalorder %s101_s22, 0  ;;  %s104_s23 = sadd.s32 1, %s807_s11 }
  0x10   : > { %p114_p8 = scmp.ne.s32.totalorder %s807_s11, %s803_s10  ;;  %p115_p9 = scmp.eq.s32.totalorder %s543_s17, 1 }
  0x11   : > { %s907_s24 = scalar_select %p102_p7, %s807_s11, %s104_s23  }
  0x12   : > { %p120_p10 = scmp.ne.s32.totalorder %s803_s10, %s799_s9  ;;  %p121_p11 = scmp.eq.s32.totalorder %s544_s18, 1 }
  0x13   : > { %p913_p12 = por %p115_p9, %p114_p8  ;;  %p546_p13 = scmp.ge.s32.totalorder %s827_s16, 2 }
  0x14   : > { %p918_p0 = por %p121_p11, %p120_p10  ;;  %p583_p1 = scmp.lt.s32.totalorder %s827_s16, 2 }
  0x15   : > { %s154_s29 = sshll.u32 %s1148_s0, 4  ;;  %s829_s30 = smov [#allocation2]   ;;  %s155_s29 = int_to_ptr.hbm [resolvable:$true] %s154_s29 }
  0x16   : > { %s156_s3 = sshll.u32 %s829_s30, 4  ;;  %p928_p2 = pnand %p583_p1, %p895_p4  ;;  %s157_s3 = int_to_ptr.vmem [resolvable:$true] %s156_s3 }
  0x17   : > { %p553_p3 = scmp.ge.s32.totalorder %s827_s16, 1  ;;  %p189_p5 = scmp.lt.s32.totalorder %s827_s16, 3 }
  0x18   : > { %s660_s5 = sshra.s32 %s155_s29, 4  ;;  %p664_p8 = pneg %p928_p2  ;;  %s661_s5 = int_to_ptr.hbm [resolvable:$true] %s660_s5 }
  0x19   : > { %s662_s6 = scalar_lea.hbm %s661_s5, 128  ;;  %s667_s12 = scalar_lea.hbm %s1148_s0, 128 }
  0x1a   : > { %p663_p7 = scmp.ne.s32.totalorder %s661_s5, %s662_s6  ;;  %p669_p4 = scmp.lt.s32.totalorder %s667_s12, %s662_s6 }
  0x1c   : > { %p665_p9 = pnand %p664_p8, %p663_p7 }
  0x1e   : > { %p666_p10 = pneg %p665_p9 }
  0x20   : > { %p671_p11 = pnand %p669_p4, %p666_p10 }
  0x22   : > { %674 = shalt.err (!%p671_p11)
}
  0x23   : > { %s830_s17 = smov 128   ;;  %s831_s18 = smov 8  }
  0x24   : > { %575 = dma.hbm_to_vmem [thread:$0]  (!%p928_p2), %s155_s29, 2048, %s157_s3, [#allocation3], %s830_s17, %s830_s17, %s831_s18  }
  0x25   : > { %p948_p1 = pnand %p553_p3, %p189_p5  ;;  %s179_s27 = sshll.u32 %s1149_s1, 4  ;;  %s180_s27 = int_to_ptr.hbm [resolvable:$true] %s179_s27 }
  0x26   : > { %s832_s28 = smov [#allocation5]   ;;  %s690_s5 = sshra.s32 %s180_s27, 4  ;;  %s691_s5 = int_to_ptr.hbm [resolvable:$true] %s690_s5 }
  0x27   : > { %s181_s30 = sshll.u32 %s832_s28, 4  ;;  %s692_s6 = scalar_lea.hbm %s691_s5, 128  ;;  %s182_s30 = int_to_ptr.vmem [resolvable:$true] %s181_s30 }
  0x28   : > { %p693_p7 = scmp.ne.s32.totalorder %s691_s5, %s692_s6  ;;  %s697_s7 = scalar_lea.hbm %s1149_s1, 128 }
  0x29   : > { %p699_p3 = scmp.lt.s32.totalorder %s697_s7, %s692_s6 }
  0x2a   : > { %p695_p9 = pnand %p693_p7, %p664_p8 }
  0x2c   : > { %p696_p10 = pneg %p695_p9 }
  0x2e   : > { %p701_p5 = pnand %p699_p3, %p696_p10 }
  0x30   : > { %704 = shalt.err (!%p701_p5)
}
  0x31   : > { %578 = dma.hbm_to_vmem [thread:$0]  (!%p928_p2), %s180_s27, 2048, %s182_s30, [#allocation6], %s830_s17, %s830_s17, %s831_s18  }
  0x32   : > { %193 = sbr.rel (%p948_p1) target bundleno = 170 (0xaa), region = 28  ;;  %s195_s8 = sand.u32 (!%p948_p1), 1, %s815_s13  }
  0x33   : > { %s554_s12 = sshll.u32 (!%p948_p1), %s195_s8, 7  ;;  %s196_s22 = scalar_lea.sflag (!%p948_p1), [#allocation3], %s195_s8 }
  0x34   : > { %s199_s23 = scalar_lea.vmem (!%p948_p1), [#allocation2], %s554_s12 }
  0x37   : > { %785 = dma.done.wait (%p899_p6), %s196_s22, 2048  }
  0x38   : > { %787 = vsyncadd (%p899_p6), %s196_s22, 4294965248  ;;  %s206_s28 = scalar_lea.sflag [#allocation6], %s195_s8  ;;  %s970_s5 = scalar_lea.vmem [#allocation5], %s554_s12 }
  0x39   : > { %789 = dma.done.wait (%p899_p6), %s206_s28, 2048  }
  0x3a   : > { %791 = vsyncadd (%p899_p6), %s206_s28, 4294965248  ;;  %s233_s4 = sand.u32 1, %s803_s10   ;;  %v833_v0 = vmov 0.0   ;;  %v250_v1 = vld [vmem:[%s199_s23] sm:$0xff]  ;;  %v251_v2 = vld [vmem:[%s199_s23 + $0x8] sm:$0xff]  ;;  %p557_p6 = scmp.ge.s32.totalorder %s819_s14, 0 }
  0x3b   : > { %s556_s17 = sshll.u32 %s233_s4, 3  ;;  %v252_v3 = vld [vmem:[%s199_s23 + $0x10] sm:$0xff]  ;;  %v253_v4 = vld [vmem:[%s199_s23 + $0x18] sm:$0xff]  ;;  %v254_v5 = vld [vmem:[%s199_s23 + $0x20] sm:$0xff] }
  0x3c   : > { %s979_s18 = scalar_lea.vmem [#allocation7], %s556_s17  ;;  %v255_v6 = vld [vmem:[%s199_s23 + $0x28] sm:$0xff]  ;;  %v256_v7 = vld [vmem:[%s199_s23 + $0x30] sm:$0xff]  ;;  %v257_v8 = vld [vmem:[%s199_s23 + $0x38] sm:$0xff] }
  0x3d   : > { %249 = vst [vmem:[%s979_s18] sm:$0xff] %v833_v0  ;;  %v258_v9 = vld [vmem:[%s199_s23 + $0x40] sm:$0xff]  ;;  %v259_v10 = vld [vmem:[%s199_s23 + $0x48] sm:$0xff]  ;;  %v260_v11 = vld [vmem:[%s199_s23 + $0x50] sm:$0xff] }
  0x3e   : > { %v261_v12 = vld [vmem:[%s199_s23 + $0x58] sm:$0xff]  ;;  %v262_v13 = vld [vmem:[%s199_s23 + $0x60] sm:$0xff]  ;;  %v263_v14 = vld [vmem:[%s199_s23 + $0x68] sm:$0xff] }
  0x3f   : > { %v266_v15 = vld [vmem:[%s970_s5] sm:$0xff]  ;;  %v267_v16 = vld [vmem:[%s970_s5 + $0x8] sm:$0xff]  ;;  %v264_v17 = vld [vmem:[%s199_s23 + $0x70] sm:$0xff] }
  0x40   : > { %v265_v18 = vld [vmem:[%s199_s23 + $0x78] sm:$0xff]  ;;  %v268_v19 = vld [vmem:[%s970_s5 + $0x10] sm:$0xff]  ;;  %v270_v21 = vld [vmem:[%s970_s5 + $0x20] sm:$0xff]  ;;  %v987_v22 = vsub.f32 %v250_v1, %v266_v15  ;;  %v989_v23 = vsub.f32 %v251_v2, %v267_v16 }
  0x41   : > { %v269_v20 = vld [vmem:[%s970_s5 + $0x18] sm:$0xff]  ;;  %v271_v24 = vld [vmem:[%s970_s5 + $0x28] sm:$0xff]  ;;  %v272_v25 = vld [vmem:[%s970_s5 + $0x30] sm:$0xff]  ;;  %v994_v27 = vsub.f32 %v252_v3, %v268_v19  ;;  %v998_v29 = vsub.f32 %v254_v5, %v270_v21  ;;  %301 = sbr.rel (%p557_p6) target bundleno = 105 (0x69), region = 44 }
  0x42   : > { %v273_v26 = vld [vmem:[%s970_s5 + $0x38] sm:$0xff]  ;;  %v996_v28 = vsub.f32 %v253_v4, %v269_v20  ;;  %v274_v30 = vld [vmem:[%s970_s5 + $0x40] sm:$0xff]  ;;  %v275_v31 = vld [vmem:[%s970_s5 + $0x48] sm:$0xff]  ;;  %v1003_v33 = vsub.f32 %v255_v6, %v271_v24  ;;  %v1005_v34 = vsub.f32 %v256_v7, %v272_v25 }
  0x43   : > { %v276_v32 = vld [vmem:[%s970_s5 + $0x50] sm:$0xff]  ;;  %v1007_v35 = vsub.f32 %v257_v8, %v273_v26  ;;  %v277_v36 = vld [vmem:[%s970_s5 + $0x58] sm:$0xff]  ;;  %v278_v37 = vld [vmem:[%s970_s5 + $0x60] sm:$0xff]  ;;  %v1012_v39 = vsub.f32 %v258_v9, %v274_v30  ;;  %v1014_v40 = vsub.f32 %v259_v10, %v275_v31 }
  0x44   : > { %v279_v38 = vld [vmem:[%s970_s5 + $0x68] sm:$0xff]  ;;  %v1016_v41 = vsub.f32 %v260_v11, %v276_v32  ;;  %v280_v42 = vld [vmem:[%s970_s5 + $0x70] sm:$0xff]  ;;  %v281_v43 = vld [vmem:[%s970_s5 + $0x78] sm:$0xff]  ;;  %v1020_v44 = vsub.f32 %v261_v12, %v277_v36  ;;  %v1022_v45 = vsub.f32 %v262_v13, %v278_v37 }
  0x45   : > { %v1024_v46 = vsub.f32 %v263_v14, %v279_v38  ;;  %v1026_v47 = vsub.f32 %v264_v17, %v280_v42  ;;  %v1028_v48 = vsub.f32 %v265_v18, %v281_v43 }
  0x46   : > { %v303_v49 = vmul.f32 %v987_v22, %v987_v22  ;;  %v304_v50 = vmul.f32 %v989_v23, %v989_v23  ;;  %v305_v51 = vmul.f32 %v994_v27, %v994_v27  ;;  %v306_v52 = vmul.f32 %v996_v28, %v996_v28  ;;  %v302_v15 = vld [vmem:[%s979_s18] sm:$0xff] }
  0x47   : > { %v307_v54 = vmul.f32 %v998_v29, %v998_v29  ;;  %v308_v56 = vmul.f32 %v1003_v33, %v1003_v33  ;;  %v309_v58 = vmul.f32 %v1005_v34, %v1005_v34  ;;  %v310_v60 = vmul.f32 %v1007_v35, %v1007_v35 }
  0x48   : > { %v319_v53 = vadd.f32 %v304_v50, %v303_v49  ;;  %v311_v62 = vmul.f32 %v1012_v39, %v1012_v39  ;;  %v312_v0 = vmul.f32 %v1014_v40, %v1014_v40  ;;  %v313_v2 = vmul.f32 %v1016_v41, %v1016_v41 }
  0x49   : > { %v314_v4 = vmul.f32 %v1020_v44, %v1020_v44  ;;  %v315_v6 = vmul.f32 %v1022_v45, %v1022_v45  ;;  %v316_v8 = vmul.f32 %v1024_v46, %v1024_v46  ;;  %v317_v10 = vmul.f32 %v1026_v47, %v1026_v47 }
  0x4a   : > { %v320_v55 = vadd.f32 %v319_v53, %v305_v51  ;;  %v318_v12 = vmul.f32 %v1028_v48, %v1028_v48 }
  0x4c   : > { %v321_v57 = vadd.f32 %v320_v55, %v306_v52 }
  0x4e   : > { %v322_v59 = vadd.f32 %v321_v57, %v307_v54 }
  0x50   : > { %v323_v61 = vadd.f32 %v322_v59, %v308_v56 }
  0x52   : > { %v324_v63 = vadd.f32 %v323_v61, %v309_v58 }
  0x54   : > { %v325_v1 = vadd.f32 %v324_v63, %v310_v60 }
  0x56   : > { %v326_v3 = vadd.f32 %v325_v1, %v311_v62 }
  0x58   : > { %v327_v5 = vadd.f32 %v326_v3, %v312_v0 }
  0x5a   : > { %v328_v7 = vadd.f32 %v327_v5, %v313_v2 }
  0x5c   : > { %v329_v9 = vadd.f32 %v328_v7, %v314_v4 }
  0x5e   : > { %v330_v11 = vadd.f32 %v329_v9, %v315_v6 }
  0x60   : > { %v331_v13 = vadd.f32 %v330_v11, %v316_v8 }
  0x62   : > { %v332_v14 = vadd.f32 %v331_v13, %v317_v10 }
  0x64   : > { %v333_v16 = vadd.f32 %v332_v14, %v318_v12 }
  0x66   : > { %v334_v17 = vadd.f32 %v333_v16, %v302_v15 }
  0x68   : > { %335 = vst [vmem:[%s979_s18] sm:$0xff] %v334_v17 }
  0x69 PF: > { %p558_p2 = scmp.lt.s32.totalorder %s819_s14, 0 }
  0x6a   : > { %s559_s21 = sshll.u32 (!%p558_p2), %s819_s14, 7 }
  0x6b   : > { %339 = sbr.rel (%p558_p2) target bundleno = 155 (0x9b), region = 48  ;;  %s341_s20 = ssub.s32 (!%p558_p2), 128, %s559_s21 }
  0x70   : > { %v342_v18 = vlaneseq  ;;  %v1067_v21 = vstv %s341_s20 }
  0x72   : > { %v343_v19 = vshrl.u32 %v342_v18, 7 }
  0x74   : > { %v344_v20 = vadd.s32 8, %v343_v19  ;;  %v345_v24 = vadd.s32 16, %v343_v19  ;;  %v346_v25 = vadd.s32 24, %v343_v19  ;;  %vm360_vm0 = vcmp.lt.s32.totalorder %v343_v19, %v1067_v21 }
  0x75   : > { %v347_v26 = vadd.s32 32, %v343_v19  ;;  %v376_v30 = vsel %vm360_vm0, %v987_v22, 0.0  ;;  %v348_v31 = vadd.s32 40, %v343_v19  ;;  %v349_v37 = vadd.s32 48, %v343_v19 }
  0x76   : > { %vm361_vm1 = vcmp.lt.s32.totalorder %v344_v20, %v1067_v21  ;;  %vm362_vm2 = vcmp.lt.s32.totalorder %v345_v24, %v1067_v21  ;;  %vm363_vm3 = vcmp.lt.s32.totalorder %v346_v25, %v1067_v21  ;;  %v393_v38 = vmul.f32 %v376_v30, %v376_v30  ;;  %v392_v24 = vld [vmem:[%s979_s18] sm:$0xff] }
  0x77   : > { %v377_v32 = vsel %vm361_vm1, %v989_v23, 0.0  ;;  %v378_v36 = vsel %vm362_vm2, %v994_v27, 0.0  ;;  %vm364_vm4 = vcmp.lt.s32.totalorder %v347_v26, %v1067_v21  ;;  %v379_v42 = vsel %vm363_vm3, %v996_v28, 0.0 }
  0x78   : > { %v394_v43 = vmul.f32 %v377_v32, %v377_v32  ;;  %v350_v49 = vadd.s32 56, %v343_v19  ;;  %vm365_vm5 = vcmp.lt.s32.totalorder %v348_v31, %v1067_v21  ;;  %v395_v50 = vmul.f32 %v378_v36, %v378_v36 }
  0x79   : > { %v380_v22 = vsel %vm364_vm4, %v998_v29, 0.0  ;;  %v351_v51 = vadd.s32 64, %v343_v19  ;;  %vm366_vm6 = vcmp.lt.s32.totalorder %v349_v37, %v1067_v21  ;;  %v396_v52 = vmul.f32 %v379_v42, %v379_v42 }
  0x7a   : > { %v409_v23 = vadd.f32 %v394_v43, %v393_v38  ;;  %v381_v27 = vsel %vm365_vm5, %v1003_v33, 0.0  ;;  %v352_v53 = vadd.s32 72, %v343_v19  ;;  %vm367_vm7 = vcmp.lt.s32.totalorder %v350_v49, %v1067_v21 }
  0x7b   : > { %v397_v54 = vmul.f32 %v380_v22, %v380_v22  ;;  %v382_v28 = vsel %vm366_vm6, %v1005_v34, 0.0  ;;  %v353_v56 = vadd.s32 80, %v343_v19  ;;  %vm368_vm8 = vcmp.lt.s32.totalorder %v351_v51, %v1067_v21 }
  0x7c   : > { %v410_v55 = vadd.f32 %v409_v23, %v395_v50  ;;  %v398_v57 = vmul.f32 %v381_v27, %v381_v27  ;;  %v383_v29 = vsel %vm367_vm7, %v1007_v35, 0.0  ;;  %v354_v59 = vadd.s32 88, %v343_v19 }
  0x7d   : > { %vm369_vm9 = vcmp.lt.s32.totalorder %v352_v53, %v1067_v21  ;;  %v399_v60 = vmul.f32 %v382_v28, %v382_v28  ;;  %v384_v33 = vsel %vm368_vm8, %v1012_v39, 0.0  ;;  %v355_v62 = vadd.s32 96, %v343_v19 }
  0x7e   : > { %v411_v58 = vadd.f32 %v410_v55, %v396_v52  ;;  %vm370_vm10 = vcmp.lt.s32.totalorder %v353_v56, %v1067_v21  ;;  %v400_v63 = vmul.f32 %v383_v29, %v383_v29  ;;  %v385_v34 = vsel %vm369_vm9, %v1014_v40, 0.0 }
  0x7f   : > { %v356_v1 = vadd.s32 104, %v343_v19  ;;  %vm371_vm11 = vcmp.lt.s32.totalorder %v354_v59, %v1067_v21  ;;  %v401_v2 = vmul.f32 %v384_v33, %v384_v33  ;;  %v386_v35 = vsel %vm370_vm10, %v1016_v41, 0.0 }
  0x80   : > { %v412_v61 = vadd.f32 %v411_v58, %v397_v54  ;;  %v357_v4 = vadd.s32 112, %v343_v19  ;;  %vm372_vm12 = vcmp.lt.s32.totalorder %v355_v62, %v1067_v21  ;;  %v402_v5 = vmul.f32 %v385_v34, %v385_v34 }
  0x81   : > { %v387_v39 = vsel %vm371_vm11, %v1020_v44, 0.0  ;;  %v358_v7 = vadd.s32 120, %v343_v19  ;;  %vm373_vm13 = vcmp.lt.s32.totalorder %v356_v1, %v1067_v21  ;;  %v403_v8 = vmul.f32 %v386_v35, %v386_v35 }
  0x82   : > { %v413_v0 = vadd.f32 %v412_v61, %v398_v57  ;;  %v388_v40 = vsel %vm372_vm12, %v1022_v45, 0.0  ;;  %vm374_vm14 = vcmp.lt.s32.totalorder %v357_v4, %v1067_v21  ;;  %v404_v10 = vmul.f32 %v387_v39, %v387_v39 }
  0x83   : > { %v389_v41 = vsel %vm373_vm13, %v1024_v46, 0.0  ;;  %vm375_vm15 = vcmp.lt.s32.totalorder %v358_v7, %v1067_v21  ;;  %v405_v12 = vmul.f32 %v388_v40, %v388_v40  ;;  %v390_v44 = vsel %vm374_vm14, %v1026_v47, 0.0 }
  0x84   : > { %v414_v3 = vadd.f32 %v413_v0, %v399_v60  ;;  %v406_v14 = vmul.f32 %v389_v41, %v389_v41  ;;  %v391_v16 = vsel %vm375_vm15, %v1028_v48, 0.0  ;;  %v407_v17 = vmul.f32 %v390_v44, %v390_v44 }
  0x85   : > { %v408_v18 = vmul.f32 %v391_v16, %v391_v16 }
  0x86   : > { %v415_v6 = vadd.f32 %v414_v3, %v400_v63 }
  0x88   : > { %v416_v9 = vadd.f32 %v415_v6, %v401_v2 }
  0x8a   : > { %v417_v11 = vadd.f32 %v416_v9, %v402_v5 }
  0x8c   : > { %v418_v13 = vadd.f32 %v417_v11, %v403_v8 }
  0x8e   : > { %v419_v15 = vadd.f32 %v418_v13, %v404_v10 }
  0x90   : > { %v420_v45 = vadd.f32 %v419_v15, %v405_v12 }
  0x92   : > { %v421_v19 = vadd.f32 %v420_v45, %v406_v14 }
  0x94   : > { %v422_v20 = vadd.f32 %v421_v19, %v407_v17 }
  0x96   : > { %v423_v25 = vadd.f32 %v422_v20, %v408_v18 }
  0x98   : > { %v424_v26 = vadd.f32 %v423_v25, %v392_v24 }
  0x9a   : > { %425 = vst [vmem:[%s979_s18] sm:$0xff] %v424_v26 }
  0x9b PF: > { %s561_s27 = sshll.u32 %s819_s14, 3  ;;  %s439_s3 = sshll.u32 %s979_s18, 4  ;;  %s440_s3 = int_to_ptr.vmem [resolvable:$true] %s439_s3 }
  0x9c   : > { %s437_s29 = scalar_lea.hbm %s1150_s2, %s561_s27  ;;  %s427_s8 = scalar_lea.sflag [#allocation4], %s233_s4 }
  0x9d   : > { %s441_s7 = sshll.u32 %s437_s29, 4  ;;  %s740_s14 = scalar_lea.hbm %s1150_s2, 16  ;;  %s442_s7 = int_to_ptr.hbm [resolvable:$true] %s441_s7 }
  0x9e   : > { %s734_s12 = sshra.s32 %s442_s7, 4  ;;  %s735_s12 = int_to_ptr.hbm [resolvable:$true] %s734_s12 }
  0x9f   : > { %s736_s22 = scalar_lea.hbm %s735_s12, 8  ;;  %p741_p1 = scmp.lt.s32.totalorder %s735_s12, %s1150_s2 }
  0xa0   : > { %p737_p8 = scmp.ne.s32.totalorder %s735_s12, %s736_s22  ;;  %p742_p7 = scmp.lt.s32.totalorder %s740_s14, %s736_s22 }
  0xa2   : > { %p738_p4 = pnand %p737_p8, %p913_p12  ;;  %p743_p9 = por %p742_p7, %p741_p1 }
  0xa4   : > { %p739_p11 = pneg %p738_p4 }
  0xa6   : > { %p744_p10 = pnand %p743_p9, %p739_p11 }
  0xa8   : > { %747 = shalt.err (!%p744_p10)
}
  0xa9   : > { %570 = dma.vmem_to_hbm [thread:$0]  (%p913_p12), %s440_s3, 128, %s442_s7, %s427_s8  }
  0xaa PF: > { %s453_s4 = sand.u32 1, %s799_s9   ;;  %p580_p3 = pnand %p546_p13, %p918_p0 }
  0xab   : > { %s454_s18 = scalar_lea.sflag [#allocation4], %s453_s4 }
  0xac   : > { %p581_p5 = pneg %p580_p3 }
  0xae   : > { %793 = dma.done.wait (%p581_p5), %s454_s18, 128  }
  0xaf   : > { %795 = vsyncadd (%p581_p5), %s454_s18, 4294967168  ;;  %s21_s16 = sadd.s32 1, %s827_s16   ;;  %s1157_s9 = smov %s803_s10 }
  0xb0   : > { %p18_p6 = scmp.ge.s32.totalorder %s21_s16, 4   ;;  %s1158_s10 = smov %s807_s11 }
  0xb1   : > { %s1159_s11 = smov %s907_s24  ;;  %s1160_s12 = smov %s815_s13 }
  0xb2   : > { %s1138_s13 = smov 0   ;;  %s1161_s14 = smov %s823_s15 }
  0xb3   : > { %s1162_s15 = smov %s1164_s19  ;;  %20 = sbr.rel (!%p18_p6) target bundleno = 9 (0x9), region = 98 }
  0xb8   :  { %460 = vsyncpa [#allocation3], 1 }
  0xb9   :  { %462 = vsyncpa [#allocation3 + $0x1], 1 }
  0xba   :  { %463 = vsyncpa [#allocation6], 1 }
  0xbb   :  { %465 = vsyncpa [#allocation6 + $0x1], 1 }
  0xbc   :  { %466 = vsyncpa [#allocation4], 1 }
  0xbd   :  { %468 = vsyncpa [#allocation4 + $0x1], 1 }

</bundles_post_ra>
